<compile_context>
chip_gen: v7x
topology: tpu7x:2x2x1
jax: 0.10.0
libtpu: 0.0.40
codegen_flags: <defaults>
</compile_context>

<pallas_src>
import jax
import jax.numpy as jnp
from jax.experimental import pallas as pl
from jax.experimental.pallas import tpu as pltpu


def _round_up(n, m):
    return ((n + m - 1) // m) * m


def value_mlp_kernel(x_ref,
                     w1_ref, b1_ref,
                     w2_ref, b2_ref,
                     w3_ref, b3_ref,
                     w4_ref, b4_ref,
                     out_ref):
    # Layers 1-3: MXU matmuls with bf16 operands, f32 accumulation.
    x = x_ref[...].astype(jnp.bfloat16)

    h = jnp.dot(x, w1_ref[...], preferred_element_type=jnp.float32) + b1_ref[...]
    h = jnp.maximum(h, 0.0)

    h = jnp.dot(h.astype(jnp.bfloat16), w2_ref[...],
                preferred_element_type=jnp.float32) + b2_ref[...]
    h = jnp.maximum(h, 0.0)

    h = jnp.dot(h.astype(jnp.bfloat16), w3_ref[...],
                preferred_element_type=jnp.float32) + b3_ref[...]
    h = jnp.maximum(h, 0.0)

    # Layer 4 (64 -> 1): broadcasted multiply + lane reduction on VPU/XLU
    # instead of a nearly-empty (64,1) MXU matmul. w4 is a (1,64) row vector.
    out = jnp.sum(h * w4_ref[...], axis=-1, keepdims=True) + b4_ref[...]
    out_ref[...] = out.astype(out_ref.dtype)


def value_forward(x, params, *, b_tile=512):
    """x: (B, state_size) float32.  Returns (B, 1) float32."""
    (w1, b1), (w2, b2), (w3, b3), (w4, b4) = params
    B, S = x.shape
    H = w1.shape[1]          # 64
    H4 = w2.shape[1]         # 256

    # Batch tile: multiple of 8 sublanes, no larger than the (padded) batch.
    b_tile = max(8, min(_round_up(b_tile, 8), _round_up(B, 8)))
    B_pad = _round_up(B, b_tile)
    if B_pad != B:
        x = jnp.pad(x, ((0, B_pad - B), (0, 0)))
    grid = (B_pad // b_tile,)

    # bf16 matmul operands (accumulation stays f32 inside the kernel).
    w1b = w1.astype(jnp.bfloat16)
    w2b = w2.astype(jnp.bfloat16)
    w3b = w3.astype(jnp.bfloat16)

    const = lambda i: (0, 0)   # weights/biases: single block, VMEM-resident
    batch = lambda i: (i, 0)   # x / out: tiled along batch

    flops = 2 * B_pad * (S * H + H * H4 + H4 * H + H)
    bytes_accessed = (
        B_pad * S * 4 + B_pad * 1 * 4                      # x in, out
        + (w1b.size + w2b.size + w3b.size) * 2             # bf16 weights
        + (b1.size + b2.size + b3.size + w4.size + b4.size) * 4
    )

    # TODO(synk): for tiny per-call batches in an RL loop, a cross-pallas_call
    # weight-prefetch (P10) would amortize the ~130 KB weight DMA; not done here.
    out = pl.pallas_call(
        value_mlp_kernel,
        out_shape=jax.ShapeDtypeStruct((B_pad, 1), jnp.float32),
        grid=grid,
        in_specs=[
            pl.BlockSpec((b_tile, S), batch),
            pl.BlockSpec(w1b.shape, const),
            pl.BlockSpec(b1.shape, const),
            pl.BlockSpec(w2b.shape, const),
            pl.BlockSpec(b2.shape, const),
            pl.BlockSpec(w3b.shape, const),
            pl.BlockSpec(b3.shape, const),
            pl.BlockSpec(w4.shape, const),
            pl.BlockSpec(b4.shape, const),
        ],
        out_specs=pl.BlockSpec((b_tile, 1), batch),
        compiler_params=pltpu.CompilerParams(
            dimension_semantics=("parallel",)),
        cost_estimate=pl.CostEstimate(
            flops=flops, transcendentals=0, bytes_accessed=bytes_accessed),
    )(x, w1b, b1, w2b, b2, w3b, b3, w4, b4)

    return out[:B]


def init_linear(key, fan_in, fan_out, *, row_vector=False):
    """Deterministic init mirroring PyTorch nn.Linear default:
    U(-1/sqrt(fan_in), 1/sqrt(fan_in)) for both weight and bias.
    Weight is (fan_in, fan_out) for x @ W, or a (1, fan_in) row vector when
    row_vector=True (used for the final 64->1 layer, computed on the VPU)."""
    kw, kb = jax.random.split(key)
    bound = 1.0 / jnp.sqrt(jnp.float32(fan_in))
    w_shape = (1, fan_in) if row_vector else (fan_in, fan_out)
    w = jax.random.uniform(kw, w_shape, jnp.float32, -bound, bound)
    b = jax.random.uniform(kb, (1, fan_out), jnp.float32, -bound, bound)
    return w, b


def make_value_params(key, state_size, hidden_size=64):
    k1, k2, k3, k4 = jax.random.split(key, 4)
    return (
        init_linear(k1, state_size, hidden_size),
        init_linear(k2, hidden_size, 4 * hidden_size),
        init_linear(k3, 4 * hidden_size, hidden_size),
        init_linear(k4, hidden_size, 1, row_vector=True),
    )


def value_forward_ref(x, params):
    """Plain-JAX reference mirroring the kernel's bf16-matmul / f32-accumulate
    numerics for a tight correctness check."""
    (w1, b1), (w2, b2), (w3, b3), (w4, b4) = params

    def mm(a, w):
        return jax.lax.dot(a.astype(jnp.bfloat16), w.astype(jnp.bfloat16),
                           preferred_element_type=jnp.float32)

    h = jnp.maximum(mm(x, w1) + b1, 0.0)
    h = jnp.maximum(mm(h, w2) + b2, 0.0)
    h = jnp.maximum(mm(h, w3) + b3, 0.0)
    return jnp.sum(h * w4, axis=-1, keepdims=True) + b4


if __name__ == "__main__":
    key = jax.random.PRNGKey(0)
    k_params, k_x1, k_x2 = jax.random.split(key, 3)

    state_size = 16
    action_size = 4  # unused by Value.forward, kept for interface parity
    params = make_value_params(k_params, state_size)

    # Small batch: single grid step.
    x_small = jax.random.normal(k_x1, (8, state_size), jnp.float32)
    out_small = jax.block_until_ready(value_forward(x_small, params))
    ref_small = value_forward_ref(x_small, params)
    assert out_small.shape == (8, 1), out_small.shape
    assert jnp.allclose(out_small, ref_small, atol=1e-3, rtol=1e-3), (
        out_small, ref_small)

    # Ragged batch: exercises the batch grid (b_tile=16 -> grid=(3,)) and the
    # tail-padding path (37 rows padded to 48, extra rows sliced away).
    x_big = jax.random.normal(k_x2, (37, state_size), jnp.float32)
    out_big = jax.block_until_ready(value_forward(x_big, params, b_tile=16))
    ref_big = value_forward_ref(x_big, params)
    assert out_big.shape == (37, 1), out_big.shape
    assert jnp.allclose(out_big, ref_big, atol=1e-3, rtol=1e-3), (
        out_big, ref_big)

    print("KERNEL_OK")
</pallas_src>

<mosaic_0001>
module attributes {stable_mosaic.version = 11 : i64} {
  func.func @value_mlp_kernel(%arg0: i32, %arg1: memref<8x16xf32, #tpu.memory_space<vmem>>, %arg2: memref<16x64xbf16, #tpu.memory_space<vmem>>, %arg3: memref<1x64xf32, #tpu.memory_space<vmem>>, %arg4: memref<64x256xbf16, #tpu.memory_space<vmem>>, %arg5: memref<1x256xf32, #tpu.memory_space<vmem>>, %arg6: memref<256x64xbf16, #tpu.memory_space<vmem>>, %arg7: memref<1x64xf32, #tpu.memory_space<vmem>>, %arg8: memref<1x64xf32, #tpu.memory_space<vmem>>, %arg9: memref<1x1xf32, #tpu.memory_space<vmem>>, %arg10: memref<8x1xf32, #tpu.memory_space<vmem>>) attributes {dimension_semantics = [#tpu.dimension_semantics<parallel>], iteration_bounds = array<i64: 1>, scalar_prefetch = 0 : i64, scratch_operands = 0 : i64, tpu.core_type = #tpu.core_type<tc>, window_params = [{transform_indices = @transform_0, window_bounds = array<i64: 8, 16>}, {pipeline_mode = #tpu.pipeline_mode<synchronous>, transform_indices = @transform_1, window_bounds = array<i64: 16, 64>}, {pipeline_mode = #tpu.pipeline_mode<synchronous>, transform_indices = @transform_2, window_bounds = array<i64: 1, 64>}, {pipeline_mode = #tpu.pipeline_mode<synchronous>, transform_indices = @transform_3, window_bounds = array<i64: 64, 256>}, {pipeline_mode = #tpu.pipeline_mode<synchronous>, transform_indices = @transform_4, window_bounds = array<i64: 1, 256>}, {pipeline_mode = #tpu.pipeline_mode<synchronous>, transform_indices = @transform_5, window_bounds = array<i64: 256, 64>}, {pipeline_mode = #tpu.pipeline_mode<synchronous>, transform_indices = @transform_6, window_bounds = array<i64: 1, 64>}, {pipeline_mode = #tpu.pipeline_mode<synchronous>, transform_indices = @transform_7, window_bounds = array<i64: 1, 64>}, {pipeline_mode = #tpu.pipeline_mode<synchronous>, transform_indices = @transform_8, window_bounds = array<i64: 1, 1>}, {transform_indices = @transform_9, window_bounds = array<i64: 8, 1>}]} {
    %c0 = arith.constant 0 : index
    %c0_0 = arith.constant 0 : index
    %0 = vector.load %arg1[%c0, %c0_0] : memref<8x16xf32, #tpu.memory_space<vmem>>, vector<8x16xf32>
    %1 = arith.truncf %0 : vector<8x16xf32> to vector<8x16xbf16>
    %c0_1 = arith.constant 0 : index
    %c0_2 = arith.constant 0 : index
    %2 = vector.load %arg2[%c0_1, %c0_2] : memref<16x64xbf16, #tpu.memory_space<vmem>>, vector<16x64xbf16>
    %cst = arith.constant dense<0.000000e+00> : vector<8x64xf32>
    %3 = tpu.matmul %1, %2, %cst {dimension_numbers = #tpu.dot_dimension_numbers<[1], [0], [0], [1], [0, 0, 1, 1], [], []>} : vector<8x16xbf16>, vector<16x64xbf16>, vector<8x64xf32> -> vector<8x64xf32>
    %c0_3 = arith.constant 0 : index
    %c0_4 = arith.constant 0 : index
    %4 = vector.load %arg3[%c0_3, %c0_4] : memref<1x64xf32, #tpu.memory_space<vmem>>, vector<1x64xf32>
    %5 = vector.broadcast %4 : vector<1x64xf32> to vector<8x64xf32>
    %6 = arith.addf %3, %5 : vector<8x64xf32>
    %cst_5 = arith.constant 0.000000e+00 : f32
    %7 = vector.broadcast %cst_5 : f32 to vector<8x64xf32>
    %8 = arith.maximumf %6, %7 : vector<8x64xf32>
    %9 = arith.truncf %8 : vector<8x64xf32> to vector<8x64xbf16>
    %c0_6 = arith.constant 0 : index
    %c0_7 = arith.constant 0 : index
    %10 = vector.load %arg4[%c0_6, %c0_7] : memref<64x256xbf16, #tpu.memory_space<vmem>>, vector<64x256xbf16>
    %cst_8 = arith.constant dense<0.000000e+00> : vector<8x256xf32>
    %11 = tpu.matmul %9, %10, %cst_8 {dimension_numbers = #tpu.dot_dimension_numbers<[1], [0], [0], [1], [0, 0, 1, 1], [], []>} : vector<8x64xbf16>, vector<64x256xbf16>, vector<8x256xf32> -> vector<8x256xf32>
    %c0_9 = arith.constant 0 : index
    %c0_10 = arith.constant 0 : index
    %12 = vector.load %arg5[%c0_9, %c0_10] : memref<1x256xf32, #tpu.memory_space<vmem>>, vector<1x256xf32>
    %13 = vector.broadcast %12 : vector<1x256xf32> to vector<8x256xf32>
    %14 = arith.addf %11, %13 : vector<8x256xf32>
    %cst_11 = arith.constant 0.000000e+00 : f32
    %15 = vector.broadcast %cst_11 : f32 to vector<8x256xf32>
    %16 = arith.maximumf %14, %15 : vector<8x256xf32>
    %17 = arith.truncf %16 : vector<8x256xf32> to vector<8x256xbf16>
    %c0_12 = arith.constant 0 : index
    %c0_13 = arith.constant 0 : index
    %18 = vector.load %arg6[%c0_12, %c0_13] : memref<256x64xbf16, #tpu.memory_space<vmem>>, vector<256x64xbf16>
    %cst_14 = arith.constant dense<0.000000e+00> : vector<8x64xf32>
    %19 = tpu.matmul %17, %18, %cst_14 {dimension_numbers = #tpu.dot_dimension_numbers<[1], [0], [0], [1], [0, 0, 1, 1], [], []>} : vector<8x256xbf16>, vector<256x64xbf16>, vector<8x64xf32> -> vector<8x64xf32>
    %c0_15 = arith.constant 0 : index
    %c0_16 = arith.constant 0 : index
    %20 = vector.load %arg7[%c0_15, %c0_16] : memref<1x64xf32, #tpu.memory_space<vmem>>, vector<1x64xf32>
    %21 = vector.broadcast %20 : vector<1x64xf32> to vector<8x64xf32>
    %22 = arith.addf %19, %21 : vector<8x64xf32>
    %cst_17 = arith.constant 0.000000e+00 : f32
    %23 = vector.broadcast %cst_17 : f32 to vector<8x64xf32>
    %24 = arith.maximumf %22, %23 : vector<8x64xf32>
    %c0_18 = arith.constant 0 : index
    %c0_19 = arith.constant 0 : index
    %25 = vector.load %arg8[%c0_18, %c0_19] : memref<1x64xf32, #tpu.memory_space<vmem>>, vector<1x64xf32>
    %26 = vector.broadcast %25 : vector<1x64xf32> to vector<8x64xf32>
    %27 = arith.mulf %24, %26 : vector<8x64xf32>
    %cst_20 = arith.constant dense<0.000000e+00> : vector<8xf32>
    %28 = vector.multi_reduction <add>, %27, %cst_20 [1] : vector<8x64xf32> to vector<8xf32>
    %29 = vector.shape_cast %28 : vector<8xf32> to vector<8x1xf32>
    %c0_21 = arith.constant 0 : index
    %c0_22 = arith.constant 0 : index
    %30 = vector.load %arg9[%c0_21, %c0_22] : memref<1x1xf32, #tpu.memory_space<vmem>>, vector<1x1xf32>
    %31 = vector.broadcast %30 : vector<1x1xf32> to vector<8x1xf32>
    %32 = arith.addf %29, %31 : vector<8x1xf32>
    %c0_23 = arith.constant 0 : index
    %c0_24 = arith.constant 0 : index
    %33 = vector.load %arg10[%c0_23, %c0_24] : memref<8x1xf32, #tpu.memory_space<vmem>>, vector<8x1xf32>
    tpu.vector_store %arg10[%c0_23, %c0_24], %32 {strides = array<i32>} : memref<8x1xf32, #tpu.memory_space<vmem>>, vector<8x1xf32>,
    return
  }
  func.func @transform_0(%arg0: i32) -> (i32, i32) {
    %c0_i32 = arith.constant 0 : i32
    %c0_i32_0 = arith.constant 0 : i32
    return %arg0, %c0_i32 : i32, i32
  }
  func.func @transform_1(%arg0: i32) -> (i32, i32) {
    %c0_i32 = arith.constant 0 : i32
    %c0_i32_0 = arith.constant 0 : i32
    %c0_i32_1 = arith.constant 0 : i32
    return %c0_i32, %c0_i32_0 : i32, i32
  }
  func.func @transform_2(%arg0: i32) -> (i32, i32) {
    %c0_i32 = arith.constant 0 : i32
    %c0_i32_0 = arith.constant 0 : i32
    %c0_i32_1 = arith.constant 0 : i32
    return %c0_i32, %c0_i32_0 : i32, i32
  }
  func.func @transform_3(%arg0: i32) -> (i32, i32) {
    %c0_i32 = arith.constant 0 : i32
    %c0_i32_0 = arith.constant 0 : i32
    %c0_i32_1 = arith.constant 0 : i32
    return %c0_i32, %c0_i32_0 : i32, i32
  }
  func.func @transform_4(%arg0: i32) -> (i32, i32) {
    %c0_i32 = arith.constant 0 : i32
    %c0_i32_0 = arith.constant 0 : i32
    %c0_i32_1 = arith.constant 0 : i32
    return %c0_i32, %c0_i32_0 : i32, i32
  }
  func.func @transform_5(%arg0: i32) -> (i32, i32) {
    %c0_i32 = arith.constant 0 : i32
    %c0_i32_0 = arith.constant 0 : i32
    %c0_i32_1 = arith.constant 0 : i32
    return %c0_i32, %c0_i32_0 : i32, i32
  }
  func.func @transform_6(%arg0: i32) -> (i32, i32) {
    %c0_i32 = arith.constant 0 : i32
    %c0_i32_0 = arith.constant 0 : i32
    %c0_i32_1 = arith.constant 0 : i32
    return %c0_i32, %c0_i32_0 : i32, i32
  }
  func.func @transform_7(%arg0: i32) -> (i32, i32) {
    %c0_i32 = arith.constant 0 : i32
    %c0_i32_0 = arith.constant 0 : i32
    %c0_i32_1 = arith.constant 0 : i32
    return %c0_i32, %c0_i32_0 : i32, i32
  }
  func.func @transform_8(%arg0: i32) -> (i32, i32) {
    %c0_i32 = arith.constant 0 : i32
    %c0_i32_0 = arith.constant 0 : i32
    %c0_i32_1 = arith.constant 0 : i32
    return %c0_i32, %c0_i32_0 : i32, i32
  }
  func.func @transform_9(%arg0: i32) -> (i32, i32) {
    %c0_i32 = arith.constant 0 : i32
    %c0_i32_0 = arith.constant 0 : i32
    return %arg0, %c0_i32 : i32, i32
  }
}

</mosaic_0001>

<bundles_post_ra>
// kernel: tpu_custom_call.1
= control target key start
LH: loop header
LB: loop body
LE: loop exit
PB: predicated region body
PF: predicated region fallthrough
CT: control target
= control target key end

     0   :  { %v501_v0 = vmov 0.0   ;;  %vm502_vm0 = vmmov 0   ;;  %vm52_vm1 = vcmask 130048   ;;  %v503_v12 = vmov 0   ;;  %s652_s1 = inlined_call_operand.vmem [shape: bf16[16,64], index: 1, kind: input, shape index: {}]   ;;  %s653_s0 = inlined_call_operand.vmem [shape: f32[8,16], index: 0, kind: input, shape index: {}]   ;;  %s654_s3 = inlined_call_operand.vmem [shape: bf16[64,256], index: 3, kind: input, shape index: {}]   ;;  %s655_s5 = inlined_call_operand.vmem [shape: bf16[256,64], index: 5, kind: input, shape index: {}]   ;;  %s656_s2 = inlined_call_operand.vmem [shape: f32[1,64], index: 2, kind: input, shape index: {}]   ;;  %s657_s4 = inlined_call_operand.vmem [shape: f32[1,256], index: 4, kind: input, shape index: {}]   ;;  %s658_s8 = inlined_call_operand.<no memory space> [shape: f32[1,1], index: 8, kind: input, shape index: {}]   ;;  %s659_s6 = inlined_call_operand.vmem [shape: f32[1,64], index: 6, kind: input, shape index: {}]   ;;  %s660_s7 = inlined_call_operand.vmem [shape: f32[1,64], index: 7, kind: input, shape index: {}]   ;;  %s661_s9 = inlined_call_operand.vmem [shape: f32[8,1], index: 9, kind: output, shape index: {}]  }
   0x1   :  { %463 = vmatprep.subr.bf16.mxu1 %v501_v0  ;;  %v472_v1 = vld [vmem:[%s652_s1] sm:$0xff]   ;;  %465 = vmatprep.mubr.msk.bf16.mxu1 %vm502_vm0, %v501_v0  ;;  %v478_v6 = vld [vmem:[%s654_s3 + $0x14] ss:$8 sps:$4 sm:$0xff]   ;;  %v476_v7 = vld [vmem:[%s654_s3 + $0x10] ss:$8 sps:$4 sm:$0xff]   ;;  %vm158_vm2 = vcmask 523264   ;;  %v108_v37 = vlaneseq  ;;  %v14_v54 = vstv %s658_s8 }
   0x2   :  { %v35_v2 = vld [vmem:[%s653_s0] sm:$0xff]  ;;  %464 = vmatpush3.bf16.msra.mxu1 %v472_v1  ;;  %v484_v10 = vld [vmem:[%s654_s3 + $0x34] ss:$8 sps:$4 sm:$0xff]   ;;  %v482_v11 = vld [vmem:[%s654_s3 + $0x30] ss:$8 sps:$4 sm:$0xff]   ;;  %vm402_vm3 = vcmask 7168  }
   0x3   :  { %v36_v3 = vpack.c.bf16 %v35_v2, %v35_v2  ;;  %v473_v4 = vld [vmem:[%s654_s3] ss:$8 sps:$4 sm:$0xff]   ;;  %v475_v5 = vld [vmem:[%s654_s3 + $0x4] ss:$8 sps:$4 sm:$0xff]   ;;  %v489_v17 = vld [vmem:[%s655_s5 + $0x50] sm:$0xff]   ;;  %v109_v38 = vshrl.u32 %v108_v37, 7 }
   0x4   :  { %162 = vmatprep.subr.bf16.mxu1 %v475_v5  ;;  %v481_v8 = vld [vmem:[%s654_s3 + $0x24] ss:$8 sps:$4 sm:$0xff]   ;;  %v479_v9 = vld [vmem:[%s654_s3 + $0x20] ss:$8 sps:$4 sm:$0xff]   ;;  %v490_v18 = vld [vmem:[%s655_s5 + $0x10] sm:$0xff]  }
   0x5   :  { %466 = vmatmul.mubr.msk.bf16.vlgmr.msra.gmra.mrb[0].mxu1 %vm52_vm1, %v36_v3  ;;  %v485_v13 = vld [vmem:[%s655_s5 + $0x40] sm:$0xff]   ;;  %v487_v15 = vld [vmem:[%s655_s5 + $0x48] sm:$0xff]   ;;  %v491_v19 = vld [vmem:[%s655_s5 + $0x58] sm:$0xff]   ;;  %v110_v39 = vsub.s32 0, %v109_v38  ;;  %v114_v41 = vsub.s32 1, %v109_v38 }
   0x6   :  { %163 = vmatpush1.bf16.msra.mxu1 %v473_v4  ;;  %194 = vmatprep.mubr.bf16.mxu1 %v503_v12  ;;  %v486_v14 = vld [vmem:[%s655_s5] sm:$0xff]   ;;  %v488_v16 = vld [vmem:[%s655_s5 + $0x8] sm:$0xff]   ;;  %v492_v20 = vld [vmem:[%s655_s5 + $0x18] sm:$0xff]   ;;  %15 = vst [vmem:[#allocation2] sm:$0x1] %v14_v54 }
   0x7   :  { %164 = vmatprep.subr.bf16.mxu1 %v478_v6  ;;  %441 = vmatprep.subr.bf16.mxu0 %v485_v13  ;;  %v493_v21 = vld [vmem:[%s655_s5 + $0x60] sm:$0xff]   ;;  %v495_v23 = vld [vmem:[%s655_s5 + $0x68] sm:$0xff]   ;;  %v497_v33 = vld [vmem:[%s655_s5 + $0x70] sm:$0xff]  }
   0x8   :  { %442 = vmatpush3.bf16.msra.mxu0 %v486_v14  ;;  %v494_v22 = vld [vmem:[%s655_s5 + $0x20] sm:$0xff]   ;;  %v496_v24 = vld [vmem:[%s655_s5 + $0x28] sm:$0xff]   ;;  %v498_v34 = vld [vmem:[%s655_s5 + $0x30] sm:$0xff]  }
   0x9   :  { %443 = vmatprep.subr.bf16.mxu0 %v487_v15  ;;  %v408_v25 = vld [vmem:[%s656_s2] ss:$0 sm:$0xff]  ;;  %v499_v35 = vld [vmem:[%s655_s5 + $0x78] sm:$0xff]  }
   0xa   :  { %165 = vmatpush1.bf16.msra.mxu1 %v476_v7  ;;  %v500_v36 = vld [vmem:[%s655_s5 + $0x38] sm:$0xff]   ;;  %v106_v40 = vld [vmem:[%s657_s4] sm:$0x3] }
   0xb   :  { %166 = vmatprep.subr.bf16.mxu1 %v481_v8  ;;  %v111_v42 = vrot.slane %v106_v40, %v110_v39  ;;  %v115_v43 = vrot.slane %v106_v40, %v114_v41  ;;  %v420_v56 = vld [vmem:[%s659_s6] ss:$0 sm:$0xff] }
   0xc   :  { %444 = vmatpush3.bf16.msra.mxu0 %v488_v16  ;;  %v437_v62 = vld [vmem:[%s660_s7] ss:$0 sm:$0xff] }
   0xd   :  { %445 = vmatprep.subr.bf16.mxu0 %v489_v17  ;;  %v438_v2 = vld [vmem:[#allocation2] ss:$0 sm:$0xff] }
   0xe   :  { %167 = vmatpush1.bf16.msra.mxu1 %v479_v9 }
   0xf   :  { %168 = vmatprep.subr.bf16.mxu1 %v484_v10 }
  0x10   :  { %446 = vmatpush3.bf16.msra.mxu0 %v490_v18 }
  0x11   :  { %447 = vmatprep.subr.bf16.mxu0 %v491_v19 }
  0x12   :  { %169 = vmatpush1.bf16.msra.mxu1 %v482_v11 }
  0x14   :  { %448 = vmatpush3.bf16.msra.mxu0 %v492_v20 }
  0x15   :  { %449 = vmatprep.subr.bf16.mxu0 %v493_v21 }
  0x18   :  { %450 = vmatpush3.bf16.msra.mxu0 %v494_v22 }
  0x19   :  { %451 = vmatprep.subr.bf16.mxu0 %v495_v23 }
  0x1c   :  { %452 = vmatpush3.bf16.msra.mxu0 %v496_v24 }
  0x1d   :  { %453 = vmatprep.subr.bf16.mxu0 %v497_v33 }
  0x20   :  { %454 = vmatpush3.bf16.msra.mxu0 %v498_v34 }
  0x21   :  { %455 = vmatprep.subr.bf16.mxu0 %v499_v35 }
  0x24   :  { %456 = vmatpush3.bf16.msra.mxu0 %v500_v36 }
  0xd8   :  { %v90_v26 = vpop.f32.mrb[0].mxu1 }
  0xd9   :  { %v91_v27 = vadd.f32 %v408_v25, %v90_v26  ;;  %v467_v28 = vpop.f32.mrb[1].mxu1 }
  0xda   :  { %v93_v29 = vpop.f32.mrb[2].mxu1 }
  0xdb   :  { %v96_v30 = vmax.f32 %v91_v27, 0.0  ;;  %v468_v31 = vpop.f32.mrb[3].mxu1 }
  0xdd   :  { %v97_v32 = vpack.c.bf16 %v96_v30, %v96_v30 }
  0xdf   :  { %419 = vmatmul.mubr.msk.bf16.vlgmr.msra.gmra.mrb[4].mxu1 %vm158_vm2, %v97_v32 }
 0x1b2   :  { %v196_v44 = vpop.f32.mrb[4].mxu1 }
 0x1b3   :  { %v197_v45 = vadd.f32 %v196_v44, %v111_v42  ;;  %v198_v46 = vpop.f32.mrb[5].mxu1 }
 0x1b4   :  { %v199_v47 = vadd.f32 %v198_v46, %v115_v43  ;;  %v200_v48 = vpop.f32.mrb[6].mxu1 }
 0x1b5   :  { %v203_v49 = vmax.f32 %v197_v45, 0.0  ;;  %v201_v50 = vpop.f32.mrb[7].mxu1 }
 0x1b6   :  { %v204_v51 = vmax.f32 %v199_v47, 0.0 }
 0x1b7   :  { %v205_v53 = vpack.c.bf16 %v203_v49, %v203_v49 }
 0x1b8   :  { %v206_v52 = vpack.c.bf16 %v204_v51, %v204_v51 }
 0x1ba   :  { %374 = vmatprep.mubr.bf16.mxu0 %v206_v52 }
 0x1bb   :  { %375 = vmatmul.mubr.bf16.vlgmr.msra.gmra.mrb[0].mxu0 %v205_v53 }
 0x28e   :  { %v457_v55 = vpop.f32.mrb[0].mxu0 }
 0x28f   :  { %v458_v57 = vpop.f32.mrb[1].mxu0 }
 0x290   :  { %v459_v58 = vadd.f32 %v458_v57, %v457_v55  ;;  %v460_v59 = vpop.f32.mrb[2].mxu0 }
 0x291   :  { %v461_v60 = vpop.f32.mrb[3].mxu0 }
 0x292   :  { %v377_v61 = vadd.f32 %v459_v58, %v420_v56 }
 0x294   :  { %v382_v63 = vmax.f32 %v377_v61, 0.0 }
 0x296   :  { %v390_v0 = vmul.f32 %v437_v62, %v382_v63 }
 0x298   :  { %v391_v1 = vsel %vm158_vm2, %v390_v0, 0.0 }
 0x299   :  { %392 = vadd.xlane.f32.xlu0 %v391_v1 }
 0x326   :  { %v393_v3 = vpop.xlane.xlu0 %392 }
 0x327   :  { %v401_v4 = vadd.f32 %v438_v2, %v393_v3 }
 0x329   :  { %403 = vst.msk [vmem:[%s661_s9] sm:$0xff] %vm402_vm3, %v401_v4 }

</bundles_post_ra>
